<compile_context>
chip_gen: v7x
topology: tpu7x:2x2x1
jax: 0.10.0
libtpu: 0.0.40
codegen_flags: <defaults>
</compile_context>

<pallas_src>
import jax
import jax.numpy as jnp
from jax.experimental import pallas as pl
from jax.experimental.pallas import tpu as pltpu


def sa_pallas(x_nhwc, w1_hwio, b1, w2_hwio, b2, block_n=1):
    """SA forward. x_nhwc: (N, H, W, C) float32; conv weights in HWIO layout."""
    N, H, W, C = x_nhwc.shape
    C4 = w1_hwio.shape[-1]
    assert N % block_n == 0
    WC, WC4 = W * C, W * C4

    # ---------- wrapper-side layout prep (plain XLA, runs once) ----------
    # Zero-pad ONLY along H; W-padding is folded into the weight matrices.
    # Flatten (W, C) into the lane axis -> exactly W*C lanes (128 for the test).
    x_hpad = jnp.pad(x_nhwc.astype(jnp.float32),
                     ((0, 0), (1, 1), (0, 0), (0, 0))).reshape(N, H + 2, WC)

    # Banded shift matrices over W: T_kx[w_in, w] = 1 iff w_in == w + kx - 1.
    # Out-of-range columns are all-zero, which reproduces SAME zero-padding in W.
    shifts = [jnp.eye(W, W, k=1 - kx, dtype=jnp.float32) for kx in range(3)]

    # conv1: fold the kx taps (and W-padding) into one (3*W*C, W*C4) matrix,
    # one (W*C, W*C4) block per ky row shift.
    w1_t = w1_hwio.astype(jnp.float32)                                  # (3,3,C,C4)
    w1_big = jnp.concatenate(
        [sum(jnp.kron(shifts[kx], w1_t[ky, kx]) for kx in range(3))
         for ky in range(3)], axis=0)                                   # (3*W*C, W*C4)
    b1_row = jnp.tile(b1.astype(jnp.float32).reshape(1, C4), (1, W))    # (1, W*C4)

    # conv2: fold kx taps, the C4 reduction AND the broadcast of the single
    # attention channel across the C output lanes.
    w2_t = w2_hwio.astype(jnp.float32).reshape(3, 3, C4)
    ones_c = jnp.ones((1, C), jnp.float32)
    w2_big = jnp.concatenate(
        [sum(jnp.kron(shifts[kx], w2_t[ky, kx].reshape(C4, 1) * ones_c)
             for kx in range(3))
         for ky in range(3)], axis=0)                                   # (3*W*C4, W*C)
    b2_smem = b2.astype(jnp.float32).reshape(1)

    def kernel(xp_ref, w1_ref, b1_ref, w2_ref, b2_ref, o_ref):
        w1m = w1_ref[...]          # (3*W*C,  W*C4)
        b1v = b1_ref[...]          # (1, W*C4)
        w2m = w2_ref[...]          # (3*W*C4, W*C)
        b2s = b2_ref[0]            # scalar bias from SMEM
        for nb in range(block_n):  # static unroll; block_n kept small
            xp = xp_ref[nb]        # (H+2, W*C), H-padded only, lane-dense
            # ---- conv1: 3 row-shifted lane-dense slabs -> one fused matmul ----
            patches1 = jnp.concatenate([xp[ky:ky + H, :] for ky in range(3)],
                                       axis=1)                          # (H, 3*W*C)
            hid = jnp.dot(patches1, w1m,
                          preferred_element_type=jnp.float32) + b1v     # (H, W*C4)
            hid = jnp.maximum(hid, 0.0)
            # ---- H-pad the hidden map with two zero rows (kx lives in w2m) ----
            zrow = jnp.zeros((1, WC4), jnp.float32)
            hpad = jnp.concatenate([zrow, hid, zrow], axis=0)           # (H+2, W*C4)
            # ---- conv2 + C4-reduce + broadcast-over-C fused into one matmul ----
            patches2 = jnp.concatenate([hpad[ky:ky + H, :] for ky in range(3)],
                                       axis=1)                          # (H, 3*W*C4)
            att = jax.nn.sigmoid(
                jnp.dot(patches2, w2m,
                        preferred_element_type=jnp.float32) + b2s)      # (H, W*C)
            # ---- y = x * att (att already replicated across the C lanes) ----
            x_center = xp[1:H + 1, :]                                   # unpadded image
            o_ref[nb] = (x_center * att).astype(o_ref.dtype)

    out = pl.pallas_call(
        kernel,
        out_shape=jax.ShapeDtypeStruct((N, H, WC), jnp.float32),
        grid_spec=pltpu.PrefetchScalarGridSpec(
            num_scalar_prefetch=0,
            grid=(N // block_n,),
            in_specs=[
                pl.BlockSpec((block_n, H + 2, WC), lambda n: (n, 0, 0)),
                pl.BlockSpec((3 * WC, WC4), lambda n: (0, 0)),   # constant block -> DMA'd once
                pl.BlockSpec((1, WC4), lambda n: (0, 0)),
                pl.BlockSpec((3 * WC4, WC), lambda n: (0, 0)),
                pl.BlockSpec(memory_space=pltpu.MemorySpace.SMEM),
            ],
            out_specs=pl.BlockSpec((block_n, H, WC), lambda n: (n, 0, 0)),
        ),
        compiler_params=pltpu.CompilerParams(
            dimension_semantics=("parallel",)),
    )(x_hpad, w1_big, b1_row, w2_big, b2_smem)

    return out.reshape(N, H, W, C).astype(x_nhwc.dtype)


def sa_reference(x_nhwc, w1_hwio, b1, w2_hwio, b2):
    """Pure-JAX reference matching PyTorch SA.forward semantics."""
    dn = ("NHWC", "HWIO", "NHWC")
    h = jax.lax.conv_general_dilated(x_nhwc, w1_hwio, (1, 1), "SAME",
                                     dimension_numbers=dn) + b1
    h = jnp.maximum(h, 0.0)
    a = jax.lax.conv_general_dilated(h, w2_hwio, (1, 1), "SAME",
                                     dimension_numbers=dn) + b2
    a = jax.nn.sigmoid(a)
    return x_nhwc * a


if __name__ == "__main__":
    # Module config: channels=8 -> hidden = channels // 4 = 2;  W*C = 128 (lane-dense)
    N, C, H, W = 2, 8, 16, 16
    C4 = C // 4

    key = jax.random.PRNGKey(0)
    kx, kw1, kb1, kw2, kb2 = jax.random.split(key, 5)

    # Input in PyTorch's NCHW, converted to NHWC for the kernel (glue only).
    x_nchw = jax.random.normal(kx, (N, C, H, W), jnp.float32)
    x_nhwc = jnp.transpose(x_nchw, (0, 2, 3, 1))

    # Deterministic "synthetic checkpoint" params (Conv2d shapes from __init__).
    w1_hwio = 0.1 * jax.random.normal(kw1, (3, 3, C, C4), jnp.float32)
    b1 = 0.1 * jax.random.normal(kb1, (C4,), jnp.float32)
    w2_hwio = 0.1 * jax.random.normal(kw2, (3, 3, C4, 1), jnp.float32)
    b2 = 0.1 * jax.random.normal(kb2, (1,), jnp.float32)

    y_nhwc = jax.block_until_ready(sa_pallas(x_nhwc, w1_hwio, b1, w2_hwio, b2))

    # Sanity check against a pure-JAX reference (same NHWC layout).
    y_ref = sa_reference(x_nhwc, w1_hwio, b1, w2_hwio, b2)
    assert y_nhwc.shape == (N, H, W, C)
    max_err = float(jnp.max(jnp.abs(y_nhwc - y_ref)))
    assert jnp.allclose(y_nhwc, y_ref, atol=2e-4, rtol=2e-4), max_err

    # Convert back to NCHW to match PyTorch output convention (glue only).
    y_nchw = jnp.transpose(y_nhwc, (0, 3, 1, 2))
    jax.block_until_ready(y_nchw)

    print("KERNEL_OK")
</pallas_src>

<mosaic_0001>
module attributes {stable_mosaic.version = 11 : i64} {
  func.func @kernel(%arg0: i32, %arg1: memref<1x18x128xf32, #tpu.memory_space<vmem>>, %arg2: memref<384x32xf32, #tpu.memory_space<vmem>>, %arg3: memref<1x32xf32, #tpu.memory_space<vmem>>, %arg4: memref<96x128xf32, #tpu.memory_space<vmem>>, %arg5: memref<1xf32, #tpu.memory_space<smem>>, %arg6: memref<1x16x128xf32, #tpu.memory_space<vmem>>) attributes {dimension_semantics = [#tpu.dimension_semantics<parallel>], iteration_bounds = array<i64: 2>, scalar_prefetch = 0 : i64, scratch_operands = 0 : i64, tpu.core_type = #tpu.core_type<tc>, window_params = [{transform_indices = @transform_0, window_bounds = array<i64: 1, 18, 128>}, {pipeline_mode = #tpu.pipeline_mode<synchronous>, transform_indices = @transform_1, window_bounds = array<i64: 384, 32>}, {pipeline_mode = #tpu.pipeline_mode<synchronous>, transform_indices = @transform_2, window_bounds = array<i64: 1, 32>}, {pipeline_mode = #tpu.pipeline_mode<synchronous>, transform_indices = @transform_3, window_bounds = array<i64: 96, 128>}, {transform_indices = @transform_4, window_bounds = array<i64: 1>}, {transform_indices = @transform_5, window_bounds = array<i64: 1, 16, 128>}]} {
    %c0 = arith.constant 0 : index
    %c0_0 = arith.constant 0 : index
    %0 = vector.load %arg2[%c0, %c0_0] : memref<384x32xf32, #tpu.memory_space<vmem>>, vector<384x32xf32>
    %c0_1 = arith.constant 0 : index
    %c0_2 = arith.constant 0 : index
    %1 = vector.load %arg3[%c0_1, %c0_2] : memref<1x32xf32, #tpu.memory_space<vmem>>, vector<1x32xf32>
    %c0_3 = arith.constant 0 : index
    %c0_4 = arith.constant 0 : index
    %2 = vector.load %arg4[%c0_3, %c0_4] : memref<96x128xf32, #tpu.memory_space<vmem>>, vector<96x128xf32>
    %c0_5 = arith.constant 0 : index
    %3 = memref.load %arg5[%c0_5] : memref<1xf32, #tpu.memory_space<smem>>
    %c0_6 = arith.constant 0 : index
    %c0_7 = arith.constant 0 : index
    %c0_8 = arith.constant 0 : index
    %4 = vector.load %arg1[%c0_6, %c0_7, %c0_8] : memref<1x18x128xf32, #tpu.memory_space<vmem>>, vector<1x18x128xf32>
    %5 = vector.shape_cast %4 : vector<1x18x128xf32> to vector<18x128xf32>
    %6 = vector.extract_strided_slice %5 {offsets = [0, 0], sizes = [16, 128], strides = [1, 1]} : vector<18x128xf32> to vector<16x128xf32>
    %7 = vector.extract_strided_slice %5 {offsets = [1, 0], sizes = [16, 128], strides = [1, 1]} : vector<18x128xf32> to vector<16x128xf32>
    %8 = vector.extract_strided_slice %5 {offsets = [2, 0], sizes = [16, 128], strides = [1, 1]} : vector<18x128xf32> to vector<16x128xf32>
    %9 = tpu.concatenate %6, %7, %8 in 1 : vector<16x128xf32>, vector<16x128xf32>, vector<16x128xf32> -> vector<16x384xf32>
    %cst = arith.constant dense<0.000000e+00> : vector<16x32xf32>
    %10 = tpu.matmul %9, %0, %cst {dimension_numbers = #tpu.dot_dimension_numbers<[1], [0], [0], [1], [0, 0, 1, 1], [], []>} : vector<16x384xf32>, vector<384x32xf32>, vector<16x32xf32> -> vector<16x32xf32>
    %11 = vector.broadcast %1 : vector<1x32xf32> to vector<16x32xf32>
    %12 = arith.addf %10, %11 : vector<16x32xf32>
    %cst_9 = arith.constant 0.000000e+00 : f32
    %13 = vector.broadcast %cst_9 : f32 to vector<16x32xf32>
    %14 = arith.maximumf %12, %13 : vector<16x32xf32>
    %cst_10 = arith.constant 0.000000e+00 : f32
    %15 = vector.broadcast %cst_10 : f32 to vector<1x32xf32>
    %16 = tpu.concatenate %15, %14, %15 in 0 : vector<1x32xf32>, vector<16x32xf32>, vector<1x32xf32> -> vector<18x32xf32>
    %17 = vector.extract_strided_slice %16 {offsets = [0, 0], sizes = [16, 32], strides = [1, 1]} : vector<18x32xf32> to vector<16x32xf32>
    %18 = vector.extract_strided_slice %16 {offsets = [1, 0], sizes = [16, 32], strides = [1, 1]} : vector<18x32xf32> to vector<16x32xf32>
    %19 = vector.extract_strided_slice %16 {offsets = [2, 0], sizes = [16, 32], strides = [1, 1]} : vector<18x32xf32> to vector<16x32xf32>
    %20 = tpu.concatenate %17, %18, %19 in 1 : vector<16x32xf32>, vector<16x32xf32>, vector<16x32xf32> -> vector<16x96xf32>
    %cst_11 = arith.constant dense<0.000000e+00> : vector<16x128xf32>
    %21 = tpu.matmul %20, %2, %cst_11 {dimension_numbers = #tpu.dot_dimension_numbers<[1], [0], [0], [1], [0, 0, 1, 1], [], []>} : vector<16x96xf32>, vector<96x128xf32>, vector<16x128xf32> -> vector<16x128xf32>
    %22 = vector.broadcast %3 : f32 to vector<16x128xf32>
    %23 = arith.addf %21, %22 : vector<16x128xf32>
    %24 = arith.negf %23 : vector<16x128xf32>
    %25 = math.exp %24 : vector<16x128xf32>
    %cst_12 = arith.constant 1.000000e+00 : f32
    %26 = vector.broadcast %cst_12 : f32 to vector<16x128xf32>
    %27 = arith.addf %26, %25 : vector<16x128xf32>
    %28 = arith.divf %26, %27 : vector<16x128xf32>
    %29 = vector.extract_strided_slice %5 {offsets = [1, 0], sizes = [16, 128], strides = [1, 1]} : vector<18x128xf32> to vector<16x128xf32>
    %30 = arith.mulf %29, %28 : vector<16x128xf32>
    %c0_13 = arith.constant 0 : index
    %c0_14 = arith.constant 0 : index
    %c0_15 = arith.constant 0 : index
    %31 = vector.load %arg6[%c0_13, %c0_14, %c0_15] : memref<1x16x128xf32, #tpu.memory_space<vmem>>, vector<1x16x128xf32>
    %32 = vector.shape_cast %31 : vector<1x16x128xf32> to vector<16x128xf32>
    %33 = vector.shape_cast %30 : vector<16x128xf32> to vector<1x16x128xf32>
    tpu.vector_store %arg6[%c0_13, %c0_14, %c0_15], %33 {strides = array<i32>} : memref<1x16x128xf32, #tpu.memory_space<vmem>>, vector<1x16x128xf32>,
    return
  }
  func.func @transform_0(%arg0: i32) -> (i32, i32, i32) {
    %c0_i32 = arith.constant 0 : i32
    %c0_i32_0 = arith.constant 0 : i32
    %c0_i32_1 = arith.constant 0 : i32
    return %arg0, %c0_i32, %c0_i32_0 : i32, i32, i32
  }
  func.func @transform_1(%arg0: i32) -> (i32, i32) {
    %c0_i32 = arith.constant 0 : i32
    %c0_i32_0 = arith.constant 0 : i32
    %c0_i32_1 = arith.constant 0 : i32
    return %c0_i32, %c0_i32_0 : i32, i32
  }
  func.func @transform_2(%arg0: i32) -> (i32, i32) {
    %c0_i32 = arith.constant 0 : i32
    %c0_i32_0 = arith.constant 0 : i32
    %c0_i32_1 = arith.constant 0 : i32
    return %c0_i32, %c0_i32_0 : i32, i32
  }
  func.func @transform_3(%arg0: i32) -> (i32, i32) {
    %c0_i32 = arith.constant 0 : i32
    %c0_i32_0 = arith.constant 0 : i32
    %c0_i32_1 = arith.constant 0 : i32
    return %c0_i32, %c0_i32_0 : i32, i32
  }
  func.func @transform_4(%arg0: i32) -> i32 {
    %c0_i32 = arith.constant 0 : i32
    %c0_i32_0 = arith.constant 0 : i32
    return %c0_i32 : i32
  }
  func.func @transform_5(%arg0: i32) -> (i32, i32, i32) {
    %c0_i32 = arith.constant 0 : i32
    %c0_i32_0 = arith.constant 0 : i32
    %c0_i32_1 = arith.constant 0 : i32
    return %arg0, %c0_i32, %c0_i32_0 : i32, i32, i32
  }
}

</mosaic_0001>

<bundles_post_ra>
// kernel: tpu_custom_call.1
= control target key start
LH: loop header
LB: loop body
LE: loop exit
PB: predicated region body
PF: predicated region fallthrough
CT: control target
= control target key end

     0   :  { %s1408_s0 = inlined_call_operand.vmem [shape: f32[2,18,128], index: 0, kind: input, shape index: {}]   ;;  %s1409_s1 = inlined_call_operand.vmem [shape: f32[384,32], index: 1, kind: input, shape index: {}]   ;;  %s1410_s2 = inlined_call_operand.vmem [shape: f32[1,32], index: 2, kind: input, shape index: {}]   ;;  %s1411_s3 = inlined_call_operand.vmem [shape: f32[96,128], index: 3, kind: input, shape index: {}]   ;;  %s1412_s4 = inlined_call_operand.<no memory space> [shape: f32[1], index: 4, kind: input, shape index: {}]   ;;  %s1413_s5 = inlined_call_operand.hbm [shape: f32[2,16,128], index: 5, kind: output, shape index: {}]  }
   0x1   :  { %10 = sst [smem:[#allocation2]] %s1412_s4 }
   0x2   :  { %11 = vsyncpa [#allocation4], 0 }
   0x3   :  { %13 = vsyncpa [#allocation4 + $0x1], 0  ;;  %s1083_s20 = smov 0   ;;  %s1085_s21 = smov 0  }
   0x4   :  { %s1087_s22 = smov 0   ;;  %s1089_s23 = smov 0  }
   0x5 LB: > { %s1104_s4 = sadd.s32 4294967295, %s1043_s23   ;;  %s692_s24 = sadd.s32 4294967294, %s1043_s23   ;;  %s1043_s23 = sphi %s1089_s23, %s1419_s23   ;;  %s1039_s22 = sphi %s1087_s22, %s1418_s22   ;;  %s1035_s21 = sphi %s1085_s21, %s1417_s21   ;;  %s1031_s20 = sphi %s1083_s20, %s1416_s20  }
   0x6   : > { %s1108_s25 = sadd.s32 1, %s1043_s23   ;;  %s136_s26 = sadd.s32 1, %s1039_s22 }
   0x7   : > { %s133_s27 = ssub.s32 %s1043_s23, %s1108_s25  ;;  %p146_p0 = scmp.ne.s32.totalorder %s1039_s22, %s1035_s21 }
   0x8   : > { %p134_p1 = scmp.eq.s32.totalorder %s133_s27, 0  ;;  %p147_p2 = scmp.eq.s32.totalorder %s1104_s4, 1 }
   0x9   : > { %p152_p3 = scmp.ne.s32.totalorder %s1035_s21, %s1031_s20  ;;  %p153_p4 = scmp.eq.s32.totalorder %s692_s24, 1 }
   0xa   : > { %s1119_s28 = scalar_select %p134_p1, %s1039_s22, %s136_s26  }
   0xb   : > { %p1121_p5 = por %p147_p2, %p146_p0  ;;  %p1125_p6 = por %p153_p4, %p152_p3 }
   0xc   : > { %p695_p7 = scmp.ge.s32.totalorder %s1043_s23, 1  ;;  %p191_p8 = scmp.lt.s32.totalorder %s1043_s23, 3 }
   0xe   : > { %p192_p9 = pnand %p695_p7, %p191_p8 }
   0xf   : > { %v240_v0 = vld [vmem:[%s1409_s1 + $0x80] sm:$0xff] (!%p192_p9)  ;;  %v241_v1 = vld [vmem:[%s1409_s1 + $0x88] sm:$0xff] (!%p192_p9)  ;;  %p219_p10 = scmp.lt.s32.totalorder (!%p192_p9), %s1104_s4, 1  ;;  %v242_v5 = vld [vmem:[%s1409_s1 + $0x90] sm:$0xff] (!%p192_p9)  ;;  %vm292_vm0 = vcmask (!%p192_p9), 1046528   ;;  %vm300_vm1 = vcmask (!%p192_p9), 1045504  }
  0x10   : > { %195 = sbr.rel (%p192_p9) target bundleno = 663 (0x297), region = 40  ;;  %v224_v2 = vld [vmem:[%s1409_s1] sm:$0xff] (!%p192_p9)  ;;  %v841_v3 = vpack.c.bf16 (!%p192_p9), %v241_v1, %v240_v0  ;;  %v225_v4 = vld [vmem:[%s1409_s1 + $0x8] sm:$0xff] (!%p192_p9)  ;;  %v243_v6 = vld [vmem:[%s1409_s1 + $0x98] sm:$0xff] (!%p192_p9)  ;;  %vm468_vm2 = vcmask (!%p192_p9), 1040384   ;;  %s1045_s16 = smov (!%p192_p9), 64  }
  0x11   : > { %v843_v7 = vpack.c.bf16 (!%p192_p9), %v225_v4, %v224_v2  ;;  %v845_v8 = vpack.c.bf16 (!%p192_p9), %v243_v6, %v242_v5  ;;  %v256_v9 = vld [vmem:[%s1409_s1 + $0x100] sm:$0xff] (!%p192_p9)  ;;  %v257_v10 = vld [vmem:[%s1409_s1 + $0x108] sm:$0xff] (!%p192_p9)  ;;  %v226_v11 = vld [vmem:[%s1409_s1 + $0x10] sm:$0xff] (!%p192_p9)  ;;  %s1046_s19 = smov (!%p192_p9), 32   ;;  %vm501_vm3 = vcmask (!%p192_p9), 261120   ;;  %vm504_vm4 = vcmask (!%p192_p9), 523264  }
  0x12   : > { %842 = vmatprep.subr.bf16.mxu0 (!%p192_p9), %v841_v3  ;;  %v873_v12 = vpack.c.bf16 (!%p192_p9), %v257_v10, %v256_v9  ;;  %v227_v13 = vld [vmem:[%s1409_s1 + $0x18] sm:$0xff] (!%p192_p9)  ;;  %v244_v14 = vld [vmem:[%s1409_s1 + $0xa0] sm:$0xff] (!%p192_p9)  ;;  %v245_v15 = vld [vmem:[%s1409_s1 + $0xa8] sm:$0xff] (!%p192_p9)  ;;  %vm508_vm5 = vcmask (!%p192_p9), 785408   ;;  %s285_s24 = sld [smem:[#allocation2]] (!%p192_p9)  ;;  %s216_s26 = sand.u32 (!%p192_p9), 1, %s1035_s21  }
  0x13   : > { %844 = vmatpush3.bf16.msra.mxu0 (!%p192_p9), %v843_v7  ;;  %v847_v16 = vpack.c.bf16 (!%p192_p9), %v227_v13, %v226_v11  ;;  %v258_v17 = vld [vmem:[%s1409_s1 + $0x110] sm:$0xff] (!%p192_p9)  ;;  %v259_v18 = vld [vmem:[%s1409_s1 + $0x118] sm:$0xff] (!%p192_p9)  ;;  %v849_v19 = vpack.c.bf16 (!%p192_p9), %v245_v15, %v244_v14  ;;  %v228_v21 = vld [vmem:[%s1409_s1 + $0x20] sm:$0xff] (!%p192_p9)  ;;  %s696_s27 = sshll.u32 (!%p192_p9), %s216_s26, 4  ;;  %s708_s6 = sshll.u32 (!%p192_p9), %s1104_s4, 8 }
  0x14   : > { %846 = vmatprep.subr.bf16.mxu0 (!%p192_p9), %v845_v8  ;;  %874 = vmatprep.subr.bf16.mxu1 (!%p192_p9), %v873_v12  ;;  %v877_v20 = vpack.c.bf16 (!%p192_p9), %v259_v18, %v258_v17  ;;  %v229_v22 = vld [vmem:[%s1409_s1 + $0x28] sm:$0xff] (!%p192_p9)  ;;  %v246_v23 = vld [vmem:[%s1409_s1 + $0xb0] sm:$0xff] (!%p192_p9)  ;;  %v247_v24 = vld [vmem:[%s1409_s1 + $0xb8] sm:$0xff] (!%p192_p9)  ;;  %s218_s7 = scalar_lea.vmem (!%p192_p9), [#allocation3], %s696_s27  ;;  %s1362_s9 = scalar_lea.hbm (!%p192_p9), %s1413_s5, %s708_s6 }
  0x15   : > { %876 = vmatpush3.bf16.msra.mxu1 (!%p192_p9), %v873_v12  ;;  %v260_v25 = vld [vmem:[%s1409_s1 + $0x120] sm:$0xff] (!%p192_p9)  ;;  %v261_v26 = vld [vmem:[%s1409_s1 + $0x128] sm:$0xff] (!%p192_p9)  ;;  %v851_v28 = vpack.c.bf16 (!%p192_p9), %v229_v22, %v228_v21  ;;  %v262_v29 = vld [vmem:[%s1409_s1 + $0x130] sm:$0xff] (!%p192_p9)  ;;  %v853_v31 = vpack.c.bf16 (!%p192_p9), %v247_v24, %v246_v23  ;;  %s1047_s10 = smov (!%p192_p9), [#allocation3]  }
  0x16   : > { %878 = vmatprep.subr.bf16.mxu1 (!%p192_p9), %v877_v20  ;;  %v881_v27 = vpack.c.bf16 (!%p192_p9), %v261_v26, %v260_v25  ;;  %v263_v30 = vld [vmem:[%s1409_s1 + $0x138] sm:$0xff] (!%p192_p9)  ;;  %v230_v32 = vld [vmem:[%s1409_s1 + $0x30] sm:$0xff] (!%p192_p9)  ;;  %v248_v34 = vld [vmem:[%s1409_s1 + $0xc0] sm:$0xff] (!%p192_p9)  ;;  %s985_s11 = sshll.u32 (!%p192_p9), %s1047_s10, 4  ;;  %s986_s11 = int_to_ptr.vmem [resolvable:$false] %s985_s11 }
  0x17   : > { %s1177_s17 = scalar_select %p219_p10, %s1104_s4, 1  ;;  %848 = vmatpush3.bf16.msra.mxu0 %v847_v16  ;;  %v231_v33 = vld [vmem:[%s1409_s1 + $0x38] sm:$0xff]  ;;  %v249_v35 = vld [vmem:[%s1409_s1 + $0xc8] sm:$0xff]  ;;  %v885_v36 = vpack.c.bf16 %v263_v30, %v262_v29  ;;  %v264_v38 = vld [vmem:[%s1409_s1 + $0x140] sm:$0xff] }
  0x18   : > { %850 = vmatprep.subr.bf16.mxu0 %v849_v19  ;;  %v855_v37 = vpack.c.bf16 %v231_v33, %v230_v32  ;;  %v265_v39 = vld [vmem:[%s1409_s1 + $0x148] sm:$0xff]  ;;  %v857_v40 = vpack.c.bf16 %v249_v35, %v248_v34  ;;  %v232_v41 = vld [vmem:[%s1409_s1 + $0x40] sm:$0xff]  ;;  %v250_v43 = vld [vmem:[%s1409_s1 + $0xd0] sm:$0xff]  ;;  %s1367_s4 = scalar_lea.sflag [#allocation4], %s216_s26  ;;  %s987_s12 = scalar_lea.vmem %s986_s11, 512 }
  0x19   : > { %s929_s18 = smul.u32 24, %s1177_s17  ;;  %880 = vmatpush3.bf16.msra.mxu1 %v877_v20  ;;  %v233_v42 = vld [vmem:[%s1409_s1 + $0x48] sm:$0xff]  ;;  %v251_v44 = vld [vmem:[%s1409_s1 + $0xd8] sm:$0xff]  ;;  %v889_v45 = vpack.c.bf16 %v265_v39, %v264_v38  ;;  %v266_v49 = vld [vmem:[%s1409_s1 + $0x150] sm:$0xff] }
  0x1a   : > { %882 = vmatprep.subr.bf16.mxu1 %v881_v27  ;;  %v859_v48 = vpack.c.bf16 %v233_v42, %v232_v41  ;;  %v267_v50 = vld [vmem:[%s1409_s1 + $0x158] sm:$0xff]  ;;  %v861_v53 = vpack.c.bf16 %v251_v44, %v250_v43  ;;  %v234_v54 = vld [vmem:[%s1409_s1 + $0x50] sm:$0xff]  ;;  %v252_v58 = vld [vmem:[%s1409_s1 + $0xe0] sm:$0xff] }
  0x1b   : > { %852 = vmatpush3.bf16.msra.mxu0 %v851_v28  ;;  %s1225_s15 = scalar_lea.vmem %s1408_s0, %s929_s18  ;;  %v235_v55 = vld [vmem:[%s1409_s1 + $0x58] sm:$0xff]  ;;  %v253_v59 = vld [vmem:[%s1409_s1 + $0xe8] sm:$0xff]  ;;  %v893_v61 = vpack.c.bf16 %v267_v50, %v266_v49  ;;  %v268_v0 = vld [vmem:[%s1409_s1 + $0x160] sm:$0xff]  ;;  %s630_s18 = sshll.u32 %s218_s7, 4  ;;  %s1364_s18 = int_to_ptr.vmem [resolvable:$true] %s630_s18 }
  0x1c   : > { %854 = vmatprep.subr.bf16.mxu0 %v853_v31  ;;  %v1240_v46 = vld [vmem:[%s1225_s15] sm:$0xff]  ;;  %v1243_v47 = vld [vmem:[%s1225_s15 + $0x8] sm:$0xff]  ;;  %v863_v63 = vpack.c.bf16 %v235_v55, %v234_v54  ;;  %v865_v2 = vpack.c.bf16 %v253_v59, %v252_v58  ;;  %v254_v5 = vld [vmem:[%s1409_s1 + $0xf0] sm:$0xff]  ;;  %s981_s17 = scalar_lea.vmem %s1364_s18, 256  ;;  %p988_p0 = scmp.lt.s32.totalorder %s1364_s18, %s986_s11 }
  0x1d   : > { %884 = vmatpush3.bf16.msra.mxu1 %v881_v27  ;;  %v293_v51 = vrot.slane %v1240_v46, 1  ;;  %v294_v52 = vrot.slane %v1243_v47, 1  ;;  %v301_v56 = vrot.slane %v1240_v46, 2  ;;  %v302_v57 = vrot.slane %v1243_v47, 2  ;;  %v269_v1 = vld [vmem:[%s1409_s1 + $0x168] sm:$0xff]  ;;  %v236_v3 = vld [vmem:[%s1409_s1 + $0x60] sm:$0xff]  ;;  %p982_p11 = scmp.ne.s32.totalorder %s1364_s18, %s981_s17  ;;  %p989_p1 = scmp.lt.s32.totalorder %s987_s12, %s981_s17 }
  0x1e   : > { %886 = vmatprep.subr.bf16.mxu1 %v885_v36  ;;  %v237_v4 = vld [vmem:[%s1409_s1 + $0x68] sm:$0xff]  ;;  %v255_v6 = vld [vmem:[%s1409_s1 + $0xf8] sm:$0xff]  ;;  %v897_v7 = vpack.c.bf16 %v269_v1, %v268_v0  ;;  %v270_v9 = vld [vmem:[%s1409_s1 + $0x170] sm:$0xff] }
  0x1f   : > { %856 = vmatpush3.bf16.msra.mxu0 %v855_v37  ;;  %v295_v60 = vsel %vm292_vm0, %v293_v51, %v294_v52  ;;  %v303_v62 = vsel %vm300_vm1, %v301_v56, %v302_v57  ;;  %v867_v8 = vpack.c.bf16 %v237_v4, %v236_v3  ;;  %v271_v10 = vld [vmem:[%s1409_s1 + $0x178] sm:$0xff]  ;;  %v869_v11 = vpack.c.bf16 %v255_v6, %v254_v5  ;;  %v238_v12 = vld [vmem:[%s1409_s1 + $0x70] sm:$0xff]  ;;  %v273_v21 = vld [vmem:[%s1411_s3] sm:$0xff]  ;;  %p983_p12 = pnand %p982_p11, %p1121_p5  ;;  %p990_p2 = por %p989_p1, %p988_p0 }
  0x20   : > { %858 = vmatprep.subr.bf16.mxu0 %v857_v40  ;;  %378 = vmatprep.mubr.f32.mxu0 %v295_v60  ;;  %v239_v13 = vld [vmem:[%s1409_s1 + $0x78] sm:$0xff]  ;;  %v1300_v14 = vld [vmem:[%s1225_s15 + $0x10] sm:$0x3]  ;;  %v901_v15 = vpack.c.bf16 %v271_v10, %v270_v9  ;;  %v274_v22 = vld [vmem:[%s1411_s3 + $0x8] sm:$0xff] }
  0x21   : > { %888 = vmatpush3.bf16.msra.mxu1 %v885_v36  ;;  %811 = vmatprep.mubr.f32.mxu1 %v303_v62  ;;  %v871_v16 = vpack.c.bf16 %v239_v13, %v238_v12  ;;  %v296_v17 = vrot.slane %v1300_v14, 1  ;;  %v304_v18 = vrot.slane %v1300_v14, 2  ;;  %v275_v23 = vld [vmem:[%s1411_s3 + $0x10] sm:$0xff]  ;;  %v905_v24 = vpack.c.bf16 %v274_v22, %v273_v21  ;;  %v276_v25 = vld [vmem:[%s1411_s3 + $0x18] sm:$0xff]  ;;  %v277_v27 = vld [vmem:[%s1411_s3 + $0x20] sm:$0xff]  ;;  %p984_p13 = pneg %p983_p12 }
  0x22   : > { %890 = vmatprep.subr.bf16.mxu1 %v889_v45  ;;  %v909_v26 = vpack.c.bf16 %v276_v25, %v275_v23  ;;  %v278_v28 = vld [vmem:[%s1411_s3 + $0x28] sm:$0xff]  ;;  %v279_v30 = vld [vmem:[%s1411_s3 + $0x30] sm:$0xff]  ;;  %v280_v31 = vld [vmem:[%s1411_s3 + $0x38] sm:$0xff] }
  0x23   : > { %860 = vmatpush3.bf16.msra.mxu0 %v859_v48  ;;  %v297_v19 = vsel %vm292_vm0, %v294_v52, %v296_v17  ;;  %v305_v20 = vsel %vm300_vm1, %v302_v57, %v304_v18  ;;  %v913_v29 = vpack.c.bf16 %v278_v28, %v277_v27  ;;  %v917_v32 = vpack.c.bf16 %v280_v31, %v279_v30  ;;  %v281_v33 = vld [vmem:[%s1411_s3 + $0x40] sm:$0xff]  ;;  %v282_v34 = vld [vmem:[%s1411_s3 + $0x48] sm:$0xff]  ;;  %v283_v49 = vld [vmem:[%s1411_s3 + $0x50] sm:$0xff]  ;;  %p991_p3 = pnand %p990_p2, %p984_p13 }
  0x24   : > { %862 = vmatprep.subr.bf16.mxu0 %v861_v53  ;;  %v921_v35 = vpack.c.bf16 %v282_v34, %v281_v33  ;;  %v698_v38 = vld [vmem:[%s1410_s2] ss:$0 sm:$0xff]  ;;  %v284_v50 = vld [vmem:[%s1411_s3 + $0x58] sm:$0xff] }
  0x25   : > { %892 = vmatpush3.bf16.msra.mxu1 %v889_v45  ;;  %v925_v51 = vpack.c.bf16 %v284_v50, %v283_v49 }
  0x26   : > { %894 = vmatprep.subr.bf16.mxu1 %v893_v61 }
  0x27   : > { %864 = vmatpush3.bf16.msra.mxu0 %v863_v63 }
  0x28   : > { %866 = vmatprep.subr.bf16.mxu0 %v865_v2 }
  0x29   : > { %896 = vmatpush3.bf16.msra.mxu1 %v893_v61 }
  0x2a   : > { %898 = vmatprep.subr.bf16.mxu1 %v897_v7 }
  0x2b   : > { %868 = vmatpush3.bf16.msra.mxu0 %v867_v8 }
  0x2c   : > { %870 = vmatprep.subr.bf16.mxu0 %v869_v11 }
  0x2d   : > { %900 = vmatpush3.bf16.msra.mxu1 %v897_v7 }
  0x2e   : > { %902 = vmatprep.subr.bf16.mxu1 %v901_v15 }
  0x2f   : > { %872 = vmatpush3.bf16.msra.mxu0 %v871_v16  ;;  %v507_v16 = vstv %s285_s24 }
  0x30   : > { %906 = vmatprep.subr.bf16.mxu0 %v905_v24 }
  0x31   : > { %904 = vmatpush3.bf16.msra.mxu1 %v901_v15 }
  0x32   : > { %379 = vmatmul.mubr.f32.vlgmr.msra.gmra.mrb[0].mxu0 %v1240_v46 }
  0x33   : > { %383 = vmatprep.mubr.f32.mxu0 %v297_v19  ;;  %908 = vmatpush3.bf16.msra.mxu0 %v905_v24 }
  0x34   : > { %812 = vmatmul.mubr.f32.vlgmr.msra.gmra.mrb[0].mxu1 %v305_v20  ;;  %910 = vmatprep.subr.bf16.mxu0 %v909_v26 }
  0x36   : > { %384 = vmatmul.mubr.f32.gmra.mrb[2].mxu0 %v1243_v47 }
  0x37   : > { %912 = vmatpush3.bf16.msra.mxu0 %v909_v26 }
  0x38   : > { %914 = vmatprep.subr.bf16.mxu0 %v913_v29 }
  0x3b   : > { %916 = vmatpush3.bf16.msra.mxu0 %v913_v29 }
  0x3c   : > { %918 = vmatprep.subr.bf16.mxu0 %v917_v32 }
  0x3f   : > { %920 = vmatpush3.bf16.msra.mxu0 %v917_v32 }
  0x40   : > { %922 = vmatprep.subr.bf16.mxu0 %v921_v35 }
  0x43   : > { %924 = vmatpush3.bf16.msra.mxu0 %v921_v35 }
  0x44   : > { %926 = vmatprep.subr.bf16.mxu0 %v925_v51 }
  0x47   : > { %928 = vmatpush3.bf16.msra.mxu0 %v925_v51 }
 0x105   : > { %v741_v36 = vpop.f32.mrb[0].mxu0 }
 0x106   : > { %v742_v37 = vpop.f32.mrb[1].mxu0 }
 0x107   : > { %v743_v39 = vadd.f32 %v742_v37, %v741_v36  ;;  %v813_v40 = vpop.f32.mrb[0].mxu1 }
 0x108   : > { %v455_v41 = vpop.f32.mrb[1].mxu1 }
 0x109   : > { %v744_v42 = vpop.f32.mrb[2].mxu0  ;;  %v381_v43 = vadd.f32 %v743_v39, %v698_v38 }
 0x10a   : > { %v745_v44 = vpop.f32.mrb[3].mxu0 }
 0x10b   : > { %v746_v45 = vadd.f32 %v745_v44, %v744_v42  ;;  %v456_v48 = vadd.f32 %v455_v41, %v381_v43 }
 0x10d   : > { %v386_v52 = vadd.f32 %v746_v45, %v698_v38  ;;  %v464_v53 = vmax.f32 %v456_v48, 0.0 }
 0x10f   : > { %v461_v54 = vadd.f32 %v813_v40, %v386_v52  ;;  %v469_v55 = vrot.slane %v464_v53, 7 }
 0x111   : > { %v465_v56 = vmax.f32 %v461_v54, 0.0  ;;  %v475_v58 = vsel %vm468_vm2, 0.0, %v469_v55 }
 0x112   : > { %v490_v61 = vrot.slane %v475_v58, 2  ;;  %v479_v63 = vrot.slane %v475_v58, 1 }
 0x113   : > { %v470_v57 = vrot.slane %v465_v56, 7 }
 0x115   : > { %v471_v59 = vsel %vm468_vm2, %v469_v55, %v470_v57  ;;  %v476_v60 = vsel %vm468_vm2, %v470_v57, 0.0 }
 0x116   : > { %v491_v62 = vrot.slane %v471_v59, 2  ;;  %v480_v0 = vrot.slane %v471_v59, 1  ;;  %v493_v3 = vrot.slane %v476_v60, 2  ;;  %v482_v4 = vrot.slane %v476_v60, 1 }
 0x118   : > { %v492_v1 = vsel %vm300_vm1, %v490_v61, %v491_v62  ;;  %v481_v2 = vsel %vm292_vm0, %v479_v63, %v480_v0  ;;  %v494_v5 = vsel %vm300_vm1, %v491_v62, %v493_v3  ;;  %v483_v6 = vsel %vm292_vm0, %v480_v0, %v482_v4 }
 0x119   : > { %495 = vrot.lane.b32.xlu1 %v492_v1, %s1045_s16  ;;  %484 = vrot.lane.b32.xlu0 %v481_v2, %s1046_s19 }
 0x11d   : > { %497 = vrot.lane.b32.xlu1 %v494_v5, %s1045_s16  ;;  %486 = vrot.lane.b32.xlu0 %v483_v6, %s1046_s19 }
 0x18b   : > { %v496_v7 = vpop.permute.xlu1 %495  ;;  %v485_v8 = vpop.permute.xlu0 %484 }
 0x18c   : > { %v502_v9 = vsel %vm501_vm3, %v475_v58, %v485_v8 }
 0x18d   : > { %v505_v10 = vsel %vm504_vm4, %v502_v9, %v496_v7 }
 0x18e   : > { %838 = vmatprep.mubr.msk.f32.mxu0 %vm508_vm5, %v505_v10 }
 0x18f   : > { %v498_v11 = vpop.permute.xlu1 %497  ;;  %v487_v12 = vpop.permute.xlu0 %486 }
 0x190   : > { %v503_v13 = vsel %vm501_vm3, %v471_v59, %v487_v12 }
 0x191   : > { %v506_v15 = vsel %vm504_vm4, %v503_v13, %v498_v11 }
 0x192   : > { %839 = vmatmul.mubr.msk.f32.vlgmr.msra.gmra.mrb[4].mxu0 %vm508_vm5, %v506_v15 }
 0x265   : > { %v840_v17 = vpop.f32.mrb[4].mxu0 }
 0x266   : > { %v587_v18 = vadd.f32 %v840_v17, %v507_v16  ;;  %v581_v19 = vpop.f32.mrb[5].mxu0 }
 0x267   : > { %v582_v20 = vadd.f32 %v581_v19, %v507_v16 }
 0x268   : > { %v702_v21 = vmul.f32 -1.442695, %v587_v18 }
 0x269   : > { %v701_v22 = vmul.f32 -1.442695, %v582_v20 }
 0x26a   : > { %973 = vpow2.f32 %v702_v21 }
 0x26b   : > { %975 = vpow2.f32 %v701_v22 }
 0x274   : > { %v974_v23 = vpop.eup %973 }
 0x275   : > { %v976_v24 = vpop.eup %975  ;;  %v597_v25 = vadd.f32 1.0, %v974_v23 }
 0x276   : > { %v596_v26 = vadd.f32 1.0, %v976_v24 }
 0x277   : > { %977 = vrcp.f32 %v597_v25 }
 0x278   : > { %979 = vrcp.f32 %v596_v26 }
 0x281   : > { %v978_v27 = vpop.eup %977 }
 0x282   : > { %v980_v28 = vpop.eup %979  ;;  %v605_v29 = vrot.slane %v978_v27, 7 }
 0x283   : > { %v604_v30 = vrot.slane %v980_v28, 7 }
 0x284   : > { %v612_v31 = vmul.f32 %v605_v29, %v1300_v14 }
 0x285   : > { %v606_v32 = vsel %vm468_vm2, %v604_v30, %v605_v29  ;;  %v610_v33 = vmul.f32 %v604_v30, %v1240_v46 }
 0x286   : > { %615 = vst [vmem:[%s218_s7 + $0xf] sm:$0x1] %v612_v31  ;;  %v611_v34 = vmul.f32 %v606_v32, %v1243_v47 }
 0x287   : > { %613 = vst [vmem:[%s218_s7 - $0x1] sm:$0xfe] %v610_v33 }
 0x288   : > { %614 = vst [vmem:[%s218_s7 + $0x7] sm:$0xff] %v611_v34 }
 0x289   : > { %994 = shalt.err (!%p991_p3)
}
 0x28a   : > { %s995_s13 = scalar_lea.hbm %s1362_s9, 256  ;;  %s999_s19 = scalar_lea.hbm %s1413_s5, 512 }
 0x28b   : > { %p996_p4 = scmp.ne.s32.totalorder %s1362_s9, %s995_s13  ;;  %p1000_p9 = scmp.lt.u32.totalorder %s1362_s9, %s1413_s5 }
 0x28c   : > { %p1001_p10 = scmp.lt.u32.totalorder %s999_s19, %s995_s13  ;;  %p1003_p12 = scmp.lt.u32.totalorder %s995_s13, %s1362_s9 }
 0x28d   : > { %p997_p7 = pnand %p996_p4, %p1121_p5 }
 0x28e   : > { %p1002_p11 = por %p1001_p10, %p1000_p9 }
 0x28f   : > { %p998_p8 = pneg %p997_p7 }
 0x290   : > { %p1004_p13 = por %p1003_p12, %p1002_p11 }
 0x292   : > { %p1005_p0 = pnand %p1004_p13, %p998_p8 }
 0x294   : > { %1008 = shalt.err (!%p1005_p0)
}
 0x295   : > { %s1048_s27 = smov 128   ;;  %s1049_s6 = smov 8  }
 0x296   : > { %930 = dma.vmem_to_hbm [thread:$0]  (%p1121_p5), %s1364_s18, 256, %s1362_s9, %s1367_s4, %s1048_s27, %s1048_s27, %s1049_s6  }
 0x297 PF: > { %p936_p1 = scmp.ge.s32.totalorder %s1043_s23, 2  ;;  %s645_s7 = sand.u32 1, %s1031_s20  }
 0x298   : > { %s646_s15 = scalar_lea.sflag [#allocation4], %s645_s7 }
 0x299   : > { %p933_p2 = pnand %p936_p1, %p1125_p6 }
 0x29b   : > { %1026 = dma.done.wait (!%p933_p2), %s646_s15, 256  }
 0x29c   : > { %1028 = vsyncadd (!%p933_p2), %s646_s15, 4294967040  ;;  %p16_p3 = scmp.ge.s32.totalorder %s1108_s25, 4   ;;  %s1416_s20 = smov %s1035_s21 }
 0x29d   : > { %s1417_s21 = smov %s1039_s22  ;;  %s1418_s22 = smov %s1119_s28 }
 0x29e   : > { %s1419_s23 = smov %s1108_s25  ;;  %18 = sbr.rel (!%p16_p3) target bundleno = 5 (0x5), region = 75 }
 0x2a5   :  { %651 = vsyncpa [#allocation4], 1 }
 0x2a6   :  { %653 = vsyncpa [#allocation4 + $0x1], 1 }

</bundles_post_ra>
